<compile_context>
chip_gen: v7x
topology: tpu7x:2x2x1
jax: 0.10.0
libtpu: 0.0.40
codegen_flags: <defaults>
</compile_context>

<pallas_src>
import functools

import jax
import jax.numpy as jnp
from jax.experimental import pallas as pl
from jax.experimental.pallas import tpu as pltpu


def _shift_kernel_sliced(fold, x_ref, o_ref):
    """Fast path (fold sublane-aligned): pure static ref-slice copies."""
    bn, T, C, HW = x_ref.shape
    f1 = min(fold, C)
    f2 = min(2 * fold, C)

    # Pass-through channels [2*fold, C): identity copy of all frames at once.
    if f2 < C:
        o_ref[:, :, f2:, :] = x_ref[:, :, f2:, :]

    # Channels [0, fold): out[t] = x[t+1], zero at the last frame.
    if f1 > 0:
        for ti in range(T - 1):
            o_ref[:, ti:ti + 1, :f1, :] = x_ref[:, ti + 1:ti + 2, :f1, :]
        o_ref[:, T - 1:T, :f1, :] = jnp.zeros((bn, 1, f1, HW), o_ref.dtype)

    # Channels [fold, 2*fold): out[t] = x[t-1], zero at the first frame.
    if f2 > f1:
        o_ref[:, 0:1, f1:f2, :] = jnp.zeros((bn, 1, f2 - f1, HW), o_ref.dtype)
        for ti in range(1, T):
            o_ref[:, ti:ti + 1, f1:f2, :] = x_ref[:, ti - 1:ti, f1:f2, :]


def _shift_kernel_where(fold, x_ref, o_ref):
    """Fallback (fold not sublane-aligned): iota/select only on [0, 2*fold)."""
    bn, T, C, HW = x_ref.shape
    f1 = min(fold, C)
    f2 = min(2 * fold, C)

    # Pass-through channels: direct copy (75% of the data at fold_div=8).
    if f2 < C:
        o_ref[:, :, f2:, :] = x_ref[:, :, f2:, :]
    if f2 == 0:
        return
    if T == 1:
        # No neighbouring frames: both shifted groups are all zeros.
        o_ref[:, :, :f2, :] = jnp.zeros((bn, T, f2, HW), o_ref.dtype)
        return

    x = x_ref[:, :, :f2, :]                                   # (bn, T, f2, HW)
    x_next = jnp.concatenate([x[:, 1:], x[:, -1:]], axis=1)   # value at t+1
    x_prev = jnp.concatenate([x[:, :1], x[:, :-1]], axis=1)   # value at t-1

    t_idx = jax.lax.broadcasted_iota(jnp.int32, x.shape, 1)
    c_idx = jax.lax.broadcasted_iota(jnp.int32, x.shape, 2)

    zero = jnp.zeros_like(x)
    a = jnp.where(t_idx < T - 1, x_next, zero)   # channels [0, fold)
    b = jnp.where(t_idx > 0, x_prev, zero)       # channels [fold, 2*fold)
    o_ref[:, :, :f2, :] = jnp.where(c_idx < f1, a, b)


def temporal_shift(x, seg_num=3, fold_div=8, max_block_bytes=4 << 20):
    """Pallas implementation of TemporalShift.forward (shift `c//fold_div` channels)."""
    nt, c, h, w = x.shape
    assert nt % seg_num == 0, "NT must be divisible by seg_num"
    n = nt // seg_num
    t = seg_num
    fold = c // fold_div
    hw = h * w
    itemsize = x.dtype.itemsize

    xr = x.reshape(n, t, c, hw)

    # ---- block sizing --------------------------------------------------------
    clip_bytes = t * c * hw * itemsize                 # one clip, full spatial
    if clip_bytes <= max_block_bytes:
        hw_blk = hw
        bn = max(1, min(n, max_block_bytes // max(clip_bytes, 1)))
        # Keep at least 2 grid steps along N when possible (dual-TC / pipelining).
        if n >= 2:
            bn = min(bn, pl.cdiv(n, 2))
    else:
        bn = 1
        if hw >= 256:
            # Lane-tile the spatial dim in multiples of 128 (ragged tail is OK).
            hw_blk = ((max_block_bytes // (t * c * itemsize)) // 128) * 128
            hw_blk = int(min(max(hw_blk, 128), hw))
        else:
            hw_blk = hw

    grid = (pl.cdiv(n, bn), pl.cdiv(hw, hw_blk))
    blk = (bn, t, c, hw_blk)
    block_bytes = bn * t * c * hw_blk * itemsize
    # 2 buffers each for in and out (double-buffered pipeline) + headroom.
    vmem_limit = int(min(64 << 20, max(32 << 20, 4 * block_bytes + (8 << 20))))

    # ---- kernel selection ----------------------------------------------------
    sublane_pack = max(1, 32 // itemsize)   # 8 (f32/i32), 16 (bf16), 32 (i8)
    if fold % sublane_pack == 0:
        kernel = functools.partial(_shift_kernel_sliced, fold)
    else:
        kernel = functools.partial(_shift_kernel_where, fold)

    out = pl.pallas_call(
        kernel,
        out_shape=jax.ShapeDtypeStruct((n, t, c, hw), x.dtype),
        grid_spec=pltpu.PrefetchScalarGridSpec(
            num_scalar_prefetch=0,
            grid=grid,
            in_specs=[pl.BlockSpec(blk, lambda i, j: (i, 0, 0, j))],
            out_specs=pl.BlockSpec(blk, lambda i, j: (i, 0, 0, j)),
        ),
        compiler_params=pltpu.CompilerParams(
            dimension_semantics=("parallel", "parallel"),
            vmem_limit_bytes=vmem_limit,
        ),
        # Same block index maps in/out and each output block depends only on its
        # own input block, so aliasing is safe (matches the inplace=True variant).
        input_output_aliases={0: 0},
        cost_estimate=pl.CostEstimate(
            flops=0, transcendentals=0, bytes_accessed=2 * x.size * itemsize),
    )(xr)

    return out.reshape(nt, c, h, w)


def _reference_temporal_shift(x, seg_num=3, fold_div=8):
    """Pure-JAX reference mirroring the PyTorch temporal_shift_function."""
    nt, c, h, w = x.shape
    n = nt // seg_num
    t = seg_num
    fold = c // fold_div
    xr = x.reshape(n, t, c, h, w)
    out = jnp.zeros_like(xr)
    out = out.at[:, :-1, :fold].set(xr[:, 1:, :fold])
    out = out.at[:, 1:, fold:2 * fold].set(xr[:, :-1, fold:2 * fold])
    out = out.at[:, :, 2 * fold:].set(xr[:, :, 2 * fold:])
    return out.reshape(nt, c, h, w)


# TODO(synk): only the forward pass is implemented; the custom autograd backward
# of InplaceTemporalShiftFunction is not translated.

if __name__ == "__main__":
    seg_num, fold_div = 3, 8
    key = jax.random.PRNGKey(0)
    k1, k2 = jax.random.split(key)

    # Case 1: sublane-aligned fold -> fast slice-copy path (N=2, fold=8, f32).
    nt, c, h, w = 2 * seg_num, 64, 16, 16
    x1 = jax.random.normal(k1, (nt, c, h, w), dtype=jnp.float32)
    y1 = jax.block_until_ready(temporal_shift(x1, seg_num=seg_num, fold_div=fold_div))
    r1 = _reference_temporal_shift(x1, seg_num=seg_num, fold_div=fold_div)
    assert y1.shape == x1.shape and y1.dtype == x1.dtype
    assert jnp.array_equal(y1, r1), "mismatch vs reference (aligned fast path)"

    # Case 2: unaligned fold (fold=1) -> where fallback, plus a ragged N grid
    # (n=3 clips blocked by bn=2 -> trailing partial block).
    nt2, c2, h2, w2 = 3 * seg_num, 8, 16, 16
    x2 = jax.random.normal(k2, (nt2, c2, h2, w2), dtype=jnp.float32)
    y2 = jax.block_until_ready(temporal_shift(x2, seg_num=seg_num, fold_div=fold_div))
    r2 = _reference_temporal_shift(x2, seg_num=seg_num, fold_div=fold_div)
    assert y2.shape == x2.shape and y2.dtype == x2.dtype
    assert jnp.array_equal(y2, r2), "mismatch vs reference (fallback / ragged grid)"

    print("KERNEL_OK")
</pallas_src>

<mosaic_0001>
module attributes {stable_mosaic.version = 11 : i64} {
  func.func @_shift_kernel_sliced(%arg0: i32, %arg1: i32, %arg2: memref<1x3x64x256xf32, #tpu.memory_space<vmem>>, %arg3: memref<1x3x64x256xf32, #tpu.memory_space<vmem>>) attributes {dimension_semantics = [#tpu.dimension_semantics<parallel>, #tpu.dimension_semantics<parallel>], iteration_bounds = array<i64: 2, 1>, scalar_prefetch = 0 : i64, scratch_operands = 0 : i64, tpu.core_type = #tpu.core_type<tc>, window_params = [{transform_indices = @transform_0, window_bounds = array<i64: 1, 3, 64, 256>}, {transform_indices = @transform_1, window_bounds = array<i64: 1, 3, 64, 256>}]} {
    %c0 = arith.constant 0 : index
    %c0_0 = arith.constant 0 : index
    %c16 = arith.constant 16 : index
    %c0_1 = arith.constant 0 : index
    %0 = vector.load %arg2[%c0, %c0_0, %c16, %c0_1] : memref<1x3x64x256xf32, #tpu.memory_space<vmem>>, vector<1x3x48x256xf32>
    %c0_2 = arith.constant 0 : index
    %c0_3 = arith.constant 0 : index
    %c16_4 = arith.constant 16 : index
    %c0_5 = arith.constant 0 : index
    %1 = vector.load %arg3[%c0_2, %c0_3, %c16_4, %c0_5] : memref<1x3x64x256xf32, #tpu.memory_space<vmem>>, vector<1x3x48x256xf32>
    tpu.vector_store %arg3[%c0_2, %c0_3, %c16_4, %c0_5], %0 {strides = array<i32>} : memref<1x3x64x256xf32, #tpu.memory_space<vmem>>, vector<1x3x48x256xf32>,
    %c0_6 = arith.constant 0 : index
    %c1 = arith.constant 1 : index
    %c0_7 = arith.constant 0 : index
    %c0_8 = arith.constant 0 : index
    %2 = vector.load %arg2[%c0_6, %c1, %c0_7, %c0_8] : memref<1x3x64x256xf32, #tpu.memory_space<vmem>>, vector<1x1x8x256xf32>
    %c0_9 = arith.constant 0 : index
    %c0_10 = arith.constant 0 : index
    %c0_11 = arith.constant 0 : index
    %c0_12 = arith.constant 0 : index
    %3 = vector.load %arg3[%c0_9, %c0_10, %c0_11, %c0_12] : memref<1x3x64x256xf32, #tpu.memory_space<vmem>>, vector<1x1x8x256xf32>
    tpu.vector_store %arg3[%c0_9, %c0_10, %c0_11, %c0_12], %2 {strides = array<i32>} : memref<1x3x64x256xf32, #tpu.memory_space<vmem>>, vector<1x1x8x256xf32>,
    %c0_13 = arith.constant 0 : index
    %c2 = arith.constant 2 : index
    %c0_14 = arith.constant 0 : index
    %c0_15 = arith.constant 0 : index
    %4 = vector.load %arg2[%c0_13, %c2, %c0_14, %c0_15] : memref<1x3x64x256xf32, #tpu.memory_space<vmem>>, vector<1x1x8x256xf32>
    %c0_16 = arith.constant 0 : index
    %c1_17 = arith.constant 1 : index
    %c0_18 = arith.constant 0 : index
    %c0_19 = arith.constant 0 : index
    %5 = vector.load %arg3[%c0_16, %c1_17, %c0_18, %c0_19] : memref<1x3x64x256xf32, #tpu.memory_space<vmem>>, vector<1x1x8x256xf32>
    tpu.vector_store %arg3[%c0_16, %c1_17, %c0_18, %c0_19], %4 {strides = array<i32>} : memref<1x3x64x256xf32, #tpu.memory_space<vmem>>, vector<1x1x8x256xf32>,
    %cst = arith.constant 0.000000e+00 : f32
    %6 = vector.broadcast %cst : f32 to vector<1x1x8x256xf32>
    %c0_20 = arith.constant 0 : index
    %c2_21 = arith.constant 2 : index
    %c0_22 = arith.constant 0 : index
    %c0_23 = arith.constant 0 : index
    %7 = vector.load %arg3[%c0_20, %c2_21, %c0_22, %c0_23] : memref<1x3x64x256xf32, #tpu.memory_space<vmem>>, vector<1x1x8x256xf32>
    tpu.vector_store %arg3[%c0_20, %c2_21, %c0_22, %c0_23], %6 {strides = array<i32>} : memref<1x3x64x256xf32, #tpu.memory_space<vmem>>, vector<1x1x8x256xf32>,
    %cst_24 = arith.constant 0.000000e+00 : f32
    %8 = vector.broadcast %cst_24 : f32 to vector<1x1x8x256xf32>
    %c0_25 = arith.constant 0 : index
    %c0_26 = arith.constant 0 : index
    %c8 = arith.constant 8 : index
    %c0_27 = arith.constant 0 : index
    %9 = vector.load %arg3[%c0_25, %c0_26, %c8, %c0_27] : memref<1x3x64x256xf32, #tpu.memory_space<vmem>>, vector<1x1x8x256xf32>
    tpu.vector_store %arg3[%c0_25, %c0_26, %c8, %c0_27], %8 {strides = array<i32>} : memref<1x3x64x256xf32, #tpu.memory_space<vmem>>, vector<1x1x8x256xf32>,
    %c0_28 = arith.constant 0 : index
    %c0_29 = arith.constant 0 : index
    %c8_30 = arith.constant 8 : index
    %c0_31 = arith.constant 0 : index
    %10 = vector.load %arg2[%c0_28, %c0_29, %c8_30, %c0_31] : memref<1x3x64x256xf32, #tpu.memory_space<vmem>>, vector<1x1x8x256xf32>
    %c0_32 = arith.constant 0 : index
    %c1_33 = arith.constant 1 : index
    %c8_34 = arith.constant 8 : index
    %c0_35 = arith.constant 0 : index
    %11 = vector.load %arg3[%c0_32, %c1_33, %c8_34, %c0_35] : memref<1x3x64x256xf32, #tpu.memory_space<vmem>>, vector<1x1x8x256xf32>
    tpu.vector_store %arg3[%c0_32, %c1_33, %c8_34, %c0_35], %10 {strides = array<i32>} : memref<1x3x64x256xf32, #tpu.memory_space<vmem>>, vector<1x1x8x256xf32>,
    %c0_36 = arith.constant 0 : index
    %c1_37 = arith.constant 1 : index
    %c8_38 = arith.constant 8 : index
    %c0_39 = arith.constant 0 : index
    %12 = vector.load %arg2[%c0_36, %c1_37, %c8_38, %c0_39] : memref<1x3x64x256xf32, #tpu.memory_space<vmem>>, vector<1x1x8x256xf32>
    %c0_40 = arith.constant 0 : index
    %c2_41 = arith.constant 2 : index
    %c8_42 = arith.constant 8 : index
    %c0_43 = arith.constant 0 : index
    %13 = vector.load %arg3[%c0_40, %c2_41, %c8_42, %c0_43] : memref<1x3x64x256xf32, #tpu.memory_space<vmem>>, vector<1x1x8x256xf32>
    tpu.vector_store %arg3[%c0_40, %c2_41, %c8_42, %c0_43], %12 {strides = array<i32>} : memref<1x3x64x256xf32, #tpu.memory_space<vmem>>, vector<1x1x8x256xf32>,
    return
  }
  func.func @transform_0(%arg0: i32, %arg1: i32) -> (i32, i32, i32, i32) {
    %c0_i32 = arith.constant 0 : i32
    %c0_i32_0 = arith.constant 0 : i32
    %c0_i32_1 = arith.constant 0 : i32
    return %arg0, %c0_i32, %c0_i32_0, %arg1 : i32, i32, i32, i32
  }
  func.func @transform_1(%arg0: i32, %arg1: i32) -> (i32, i32, i32, i32) {
    %c0_i32 = arith.constant 0 : i32
    %c0_i32_0 = arith.constant 0 : i32
    %c0_i32_1 = arith.constant 0 : i32
    return %arg0, %c0_i32, %c0_i32_0, %arg1 : i32, i32, i32, i32
  }
}

</mosaic_0001>

<bundles_post_ra>
// kernel: tpu_custom_call.1
= control target key start
LH: loop header
LB: loop body
LE: loop exit
PB: predicated region body
PF: predicated region fallthrough
CT: control target
= control target key end

     0   :  { %6 = vsyncpa [#allocation3], 0  ;;  %s851_s0 = inlined_call_operand.hbm [shape: f32[2,3,64,256], index: 0, kind: input, shape index: {}, may-alias: {0,1}]   ;;  %s852_s1 = inlined_call_operand.hbm [shape: f32[2,3,64,256], index: 1, kind: output, shape index: {}, may-alias: {0,1}]  }
   0x1   :  { %8 = vsyncpa [#allocation3 + $0x1], 0 }
   0x2   :  { %9 = vsyncpa [#allocation4], 0 }
   0x3   :  { %11 = vsyncpa [#allocation4 + $0x1], 0  ;;  %s579_s6 = smov 0   ;;  %s581_s7 = smov 0  }
   0x4   :  { %s583_s8 = smov 0   ;;  %s585_s9 = smov 0  }
   0x5   :  { %s587_s10 = smov 0   ;;  %s589_s11 = smov 0  }
   0x6 LB: > { %s354_s12 = sadd.s32 4294967295, %s560_s11   ;;  %s355_s13 = sadd.s32 4294967294, %s560_s11   ;;  %s560_s11 = sphi %s589_s11, %s17_s11   ;;  %s556_s10 = sphi %s587_s10, %s867_s10   ;;  %s552_s9 = sphi %s585_s9, %s866_s9   ;;  %s548_s8 = sphi %s583_s8, %s865_s8   ;;  %s544_s7 = sphi %s581_s7, %s864_s7   ;;  %s540_s6 = sphi %s579_s6, %s863_s6  }
   0x7   : > { %s29_s14 = sadd.s32 1, %s556_s10  ;;  %s38_s15 = sadd.s32 1, %s548_s8 }
   0x8   : > { %p31_p0 = scmp.ge.s32.totalorder %s29_s14, 2  ;;  %p45_p1 = scmp.ne.s32.totalorder %s548_s8, %s544_s7 }
   0x9   : > { %p46_p2 = scmp.eq.s32.totalorder %s560_s11, 0  ;;  %p51_p3 = scmp.ne.s32.totalorder %s544_s7, %s540_s6 }
   0xa   : > { %s869_s14 = smov (%p31_p0, %s29_s14), 0  ;;  %p52_p5 = scmp.eq.s32.totalorder %s354_s12, 0 }
   0xb   : > { %p620_p4 = por %p46_p2, %p45_p1  ;;  %s33_s17 = ssub.s32 %s556_s10, %s869_s14 }
   0xc   : > { %p77_p6 = scmp.eq.s32.totalorder %s354_s12, 1  ;;  %p36_p7 = scmp.eq.s32.totalorder %s33_s17, 0 }
   0xd   : > { %p626_p8 = por %p52_p5, %p51_p3  ;;  %p83_p10 = scmp.eq.s32.totalorder %s355_s13, 1 }
   0xe   : > { %p630_p9 = por %p77_p6, %p45_p1  ;;  %p393_p13 = scmp.lt.s32.totalorder %s560_s11, 2 }
   0xf   : > { %s635_s20 = scalar_select %p36_p7, %s548_s8, %s38_s15  }
  0x10   : > { %s856_s19 = scalar_select %p630_p9, 1, 0 }
  0x11   : > { %p637_p11 = por %p83_p10, %p51_p3  ;;  %s103_s22 = sand.u32 1, %s548_s8  }
  0x12   : > { %s377_s23 = smul.u32 384, %s103_s22  ;;  %p647_p0 = pnand %p393_p13, %p620_p4 }
  0x13   : > { %s857_s21 = scalar_select %p637_p11, 1, 0 }
  0x14   : > { %s378_s24 = smul.u32 6144, %s556_s10  ;;  %s107_s29 = scalar_lea.vmem [#allocation2], %s377_s23 }
  0x15   : > { %s116_s30 = sshll.u32 %s107_s29, 4  ;;  %s659_s2 = scalar_lea.sflag [#allocation3], %s103_s22  ;;  %s656_s30 = int_to_ptr.vmem [resolvable:$true] %s116_s30 }
  0x16   : > { %s654_s28 = scalar_lea.hbm %s851_s0, %s378_s24  ;;  %p450_p3 = pneg %p647_p0 }
  0x17   : > { %s448_s3 = scalar_lea.hbm %s654_s28, 6144  ;;  %s453_s12 = scalar_lea.hbm %s851_s0, 12288 }
  0x18   : > { %p449_p2 = scmp.ne.s32.totalorder %s654_s28, %s448_s3  ;;  %p454_p6 = scmp.lt.u32.totalorder %s654_s28, %s851_s0 }
  0x19   : > { %p455_p7 = scmp.lt.u32.totalorder %s453_s12, %s448_s3  ;;  %p457_p13 = scmp.lt.u32.totalorder %s448_s3, %s654_s28 }
  0x1a   : > { %p451_p4 = pnand %p450_p3, %p449_p2 }
  0x1b   : > { %p456_p10 = por %p455_p7, %p454_p6 }
  0x1c   : > { %p452_p5 = pneg %p451_p4 }
  0x1d   : > { %p458_p12 = por %p457_p13, %p456_p10 }
  0x1f   : > { %p459_p1 = pnand %p458_p12, %p452_p5 }
  0x21   : > { %462 = shalt.err (!%p459_p1)
}
  0x22   : > { %s463_s16 = scalar_lea.vmem %s656_s30, 6144  ;;  %s562_s17 = smov [#allocation2]  }
  0x23   : > { %p464_p2 = scmp.ne.s32.totalorder %s656_s30, %s463_s16  ;;  %s468_s22 = sshll.u32 %s562_s17, 4  ;;  %s469_s22 = int_to_ptr.vmem [resolvable:$false] %s468_s22 }
  0x24   : > { %s470_s23 = scalar_lea.vmem %s469_s22, 12288  ;;  %p471_p9 = scmp.lt.s32.totalorder %s656_s30, %s469_s22 }
  0x25   : > { %p466_p4 = pnand %p464_p2, %p450_p3  ;;  %p472_p6 = scmp.lt.s32.totalorder %s470_s23, %s463_s16 }
  0x27   : > { %p467_p11 = pneg %p466_p4  ;;  %p473_p7 = por %p472_p6, %p471_p9 }
  0x29   : > { %p474_p10 = pnand %p473_p7, %p467_p11 }
  0x2b   : > { %477 = shalt.err (!%p474_p10)
}
  0x2c   : > { %s563_s24 = smov 256   ;;  %s564_s26 = smov 16  }
  0x2d   : > { %388 = dma.hbm_to_vmem [thread:$0]  (!%p647_p0), %s654_s28, 6144, %s656_s30, %s659_s2, %s563_s24, %s563_s24, %s564_s26  }
  0x2e   : > { %p124_p12 = scmp.lt.s32.totalorder %s560_s11, 3  ;;  %p859_p1 = scmp.ge.s32.totalorder %s560_s11, 1 }
  0x30   : > { %p125_p3 = pnand %p859_p1, %p124_p12 }
  0x31   : > { %s691_s27 = sand.u32 (!%p125_p3), 1, %s544_s7  }
  0x32   : > { %128 = sbr.rel (%p125_p3) target bundleno = 97 (0x61), region = 24  ;;  %s131_s3 = scalar_lea.sflag (!%p125_p3), [#allocation3], %s691_s27 }
  0x33   : > { %s379_s29 = smul.u32 (!%p125_p3), 384, %s691_s27 }
  0x35   : > { %s695_s4 = scalar_lea.vmem (!%p125_p3), [#allocation2], %s379_s29 }
  0x39   : > { %531 = dma.done.wait (%p626_p8), %s131_s3, 6144  }
  0x3a   : > { %533 = vsyncadd (%p626_p8), %s131_s3, 4294961152  ;;  %s701_s25 = scalar_lea.vmem [#allocation5], %s379_s29  ;;  %v565_v0 = vmov 0.0   ;;  %v155_v1 = vld [vmem:[%s695_s4 + $0x20] sm:$0xff]  ;;  %v156_v2 = vld [vmem:[%s695_s4 + $0x28] sm:$0xff]  ;;  %s380_s18 = smul.u32 6144, %s552_s9 }
  0x3b   : > { %366 = vst [vmem:[%s701_s25 + $0x100] sm:$0xff] %v565_v0  ;;  %367 = vst [vmem:[%s701_s25 + $0x108] sm:$0xff] %v565_v0  ;;  %v157_v3 = vld [vmem:[%s695_s4 + $0x30] sm:$0xff]  ;;  %v158_v4 = vld [vmem:[%s695_s4 + $0x38] sm:$0xff]  ;;  %s267_s28 = sshll.u32 %s701_s25, 4  ;;  %s252_s5 = scalar_lea.sflag [#allocation4], %s691_s27  ;;  %s784_s28 = int_to_ptr.vmem [resolvable:$true] %s267_s28 }
  0x3c   : > { %241 = vst [vmem:[%s701_s25 + $0x10] sm:$0xff] %v565_v0  ;;  %242 = vst [vmem:[%s701_s25 + $0x18] sm:$0xff] %v565_v0  ;;  %v159_v5 = vld [vmem:[%s695_s4 + $0x40] sm:$0xff]  ;;  %v160_v6 = vld [vmem:[%s695_s4 + $0x48] sm:$0xff]  ;;  %s795_s2 = scalar_lea.hbm %s852_s1, %s380_s18  ;;  %s478_s12 = scalar_lea.vmem %s784_s28, 6144 }
  0x3d   : > { %191 = vst [vmem:[%s701_s25 + $0x20] sm:$0xff] %v155_v1  ;;  %192 = vst [vmem:[%s701_s25 + $0x28] sm:$0xff] %v156_v2  ;;  %v161_v7 = vld [vmem:[%s695_s4 + $0x50] sm:$0xff]  ;;  %v162_v8 = vld [vmem:[%s695_s4 + $0x58] sm:$0xff]  ;;  %p479_p8 = scmp.ne.s32.totalorder %s784_s28, %s478_s12  ;;  %p860_p9 = scmp.ne.s32.totalorder %s856_s19, 0 }
  0x3e   : > { %193 = vst [vmem:[%s701_s25 + $0x30] sm:$0xff] %v157_v3  ;;  %194 = vst [vmem:[%s701_s25 + $0x38] sm:$0xff] %v158_v4  ;;  %v163_v9 = vld [vmem:[%s695_s4 + $0x60] sm:$0xff]  ;;  %v164_v10 = vld [vmem:[%s695_s4 + $0x68] sm:$0xff]  ;;  %s566_s13 = smov [#allocation5]  }
  0x3f   : > { %195 = vst [vmem:[%s701_s25 + $0x40] sm:$0xff] %v159_v5  ;;  %196 = vst [vmem:[%s701_s25 + $0x48] sm:$0xff] %v160_v6  ;;  %v165_v11 = vld [vmem:[%s695_s4 + $0x70] sm:$0xff]  ;;  %v166_v12 = vld [vmem:[%s695_s4 + $0x78] sm:$0xff]  ;;  %p480_p11 = pnand %p479_p8, %p860_p9  ;;  %s482_s15 = sshll.u32 %s566_s13, 4  ;;  %s483_s15 = int_to_ptr.vmem [resolvable:$false] %s482_s15 }
  0x40   : > { %197 = vst [vmem:[%s701_s25 + $0x50] sm:$0xff] %v161_v7  ;;  %198 = vst [vmem:[%s701_s25 + $0x58] sm:$0xff] %v162_v8  ;;  %v167_v13 = vld [vmem:[%s695_s4 + $0xa0] sm:$0xff]  ;;  %v168_v14 = vld [vmem:[%s695_s4 + $0xa8] sm:$0xff]  ;;  %s484_s16 = scalar_lea.vmem %s483_s15, 12288  ;;  %p485_p5 = scmp.lt.s32.totalorder %s784_s28, %s483_s15 }
  0x41   : > { %199 = vst [vmem:[%s701_s25 + $0x60] sm:$0xff] %v163_v9  ;;  %200 = vst [vmem:[%s701_s25 + $0x68] sm:$0xff] %v164_v10  ;;  %v169_v15 = vld [vmem:[%s695_s4 + $0xb0] sm:$0xff]  ;;  %v170_v16 = vld [vmem:[%s695_s4 + $0xb8] sm:$0xff]  ;;  %p481_p0 = pneg %p480_p11  ;;  %p486_p13 = scmp.lt.s32.totalorder %s484_s16, %s478_s12 }
  0x42   : > { %201 = vst [vmem:[%s701_s25 + $0x70] sm:$0xff] %v165_v11  ;;  %202 = vst [vmem:[%s701_s25 + $0x78] sm:$0xff] %v166_v12  ;;  %v171_v17 = vld [vmem:[%s695_s4 + $0xc0] sm:$0xff]  ;;  %v172_v18 = vld [vmem:[%s695_s4 + $0xc8] sm:$0xff] }
  0x43   : > { %203 = vst [vmem:[%s701_s25 + $0xa0] sm:$0xff] %v167_v13  ;;  %204 = vst [vmem:[%s701_s25 + $0xa8] sm:$0xff] %v168_v14  ;;  %v173_v19 = vld [vmem:[%s695_s4 + $0xd0] sm:$0xff]  ;;  %v174_v20 = vld [vmem:[%s695_s4 + $0xd8] sm:$0xff]  ;;  %p487_p2 = por %p486_p13, %p485_p5 }
  0x44   : > { %205 = vst [vmem:[%s701_s25 + $0xb0] sm:$0xff] %v169_v15  ;;  %206 = vst [vmem:[%s701_s25 + $0xb8] sm:$0xff] %v170_v16  ;;  %v175_v21 = vld [vmem:[%s695_s4 + $0xe0] sm:$0xff]  ;;  %v176_v22 = vld [vmem:[%s695_s4 + $0xe8] sm:$0xff] }
  0x45   : > { %207 = vst [vmem:[%s701_s25 + $0xc0] sm:$0xff] %v171_v17  ;;  %208 = vst [vmem:[%s701_s25 + $0xc8] sm:$0xff] %v172_v18  ;;  %v177_v23 = vld [vmem:[%s695_s4 + $0xf0] sm:$0xff]  ;;  %v178_v24 = vld [vmem:[%s695_s4 + $0xf8] sm:$0xff]  ;;  %p488_p4 = pnand %p487_p2, %p481_p0 }
  0x46   : > { %209 = vst [vmem:[%s701_s25 + $0xd0] sm:$0xff] %v173_v19  ;;  %210 = vst [vmem:[%s701_s25 + $0xd8] sm:$0xff] %v174_v20  ;;  %v179_v25 = vld [vmem:[%s695_s4 + $0x120] sm:$0xff]  ;;  %v180_v26 = vld [vmem:[%s695_s4 + $0x128] sm:$0xff] }
  0x47   : > { %211 = vst [vmem:[%s701_s25 + $0xe0] sm:$0xff] %v175_v21  ;;  %212 = vst [vmem:[%s701_s25 + $0xe8] sm:$0xff] %v176_v22  ;;  %v181_v27 = vld [vmem:[%s695_s4 + $0x130] sm:$0xff]  ;;  %v182_v28 = vld [vmem:[%s695_s4 + $0x138] sm:$0xff] }
  0x48   : > { %213 = vst [vmem:[%s701_s25 + $0xf0] sm:$0xff] %v177_v23  ;;  %214 = vst [vmem:[%s701_s25 + $0xf8] sm:$0xff] %v178_v24  ;;  %v183_v29 = vld [vmem:[%s695_s4 + $0x140] sm:$0xff]  ;;  %v184_v30 = vld [vmem:[%s695_s4 + $0x148] sm:$0xff] }
  0x49   : > { %215 = vst [vmem:[%s701_s25 + $0x120] sm:$0xff] %v179_v25  ;;  %216 = vst [vmem:[%s701_s25 + $0x128] sm:$0xff] %v180_v26  ;;  %v185_v31 = vld [vmem:[%s695_s4 + $0x150] sm:$0xff]  ;;  %v186_v32 = vld [vmem:[%s695_s4 + $0x158] sm:$0xff] }
  0x4a   : > { %217 = vst [vmem:[%s701_s25 + $0x130] sm:$0xff] %v181_v27  ;;  %218 = vst [vmem:[%s701_s25 + $0x138] sm:$0xff] %v182_v28  ;;  %v187_v33 = vld [vmem:[%s695_s4 + $0x160] sm:$0xff]  ;;  %v188_v34 = vld [vmem:[%s695_s4 + $0x168] sm:$0xff] }
  0x4b   : > { %219 = vst [vmem:[%s701_s25 + $0x140] sm:$0xff] %v183_v29  ;;  %220 = vst [vmem:[%s701_s25 + $0x148] sm:$0xff] %v184_v30  ;;  %v189_v35 = vld [vmem:[%s695_s4 + $0x170] sm:$0xff]  ;;  %v190_v36 = vld [vmem:[%s695_s4 + $0x178] sm:$0xff] }
  0x4c   : > { %221 = vst [vmem:[%s701_s25 + $0x150] sm:$0xff] %v185_v31  ;;  %222 = vst [vmem:[%s701_s25 + $0x158] sm:$0xff] %v186_v32  ;;  %v360_v37 = vld [vmem:[%s695_s4 + $0x80] sm:$0xff]  ;;  %v361_v38 = vld [vmem:[%s695_s4 + $0x88] sm:$0xff] }
  0x4d   : > { %223 = vst [vmem:[%s701_s25 + $0x160] sm:$0xff] %v187_v33  ;;  %224 = vst [vmem:[%s701_s25 + $0x168] sm:$0xff] %v188_v34  ;;  %v362_v39 = vld [vmem:[%s695_s4 + $0x100] sm:$0xff]  ;;  %v363_v40 = vld [vmem:[%s695_s4 + $0x108] sm:$0xff] }
  0x4e   : > { %225 = vst [vmem:[%s701_s25 + $0x170] sm:$0xff] %v189_v35  ;;  %226 = vst [vmem:[%s701_s25 + $0x178] sm:$0xff] %v190_v36  ;;  %v243_v41 = vld [vmem:[%s695_s4 + $0x10] sm:$0xff]  ;;  %v244_v42 = vld [vmem:[%s695_s4 + $0x18] sm:$0xff] }
  0x4f   : > { %230 = vst [vmem:[%s701_s25] sm:$0xff] %v360_v37  ;;  %231 = vst [vmem:[%s701_s25 + $0x8] sm:$0xff] %v361_v38  ;;  %v370_v43 = vld [vmem:[%s695_s4 + $0x90] sm:$0xff]  ;;  %v371_v44 = vld [vmem:[%s695_s4 + $0x98] sm:$0xff] }
  0x50   : > { %364 = vst [vmem:[%s701_s25 + $0x80] sm:$0xff] %v362_v39  ;;  %365 = vst [vmem:[%s701_s25 + $0x88] sm:$0xff] %v363_v40 }
  0x51   : > { %368 = vst [vmem:[%s701_s25 + $0x90] sm:$0xff] %v243_v41  ;;  %369 = vst [vmem:[%s701_s25 + $0x98] sm:$0xff] %v244_v42 }
  0x52   : > { %372 = vst [vmem:[%s701_s25 + $0x110] sm:$0xff] %v370_v43  ;;  %373 = vst [vmem:[%s701_s25 + $0x118] sm:$0xff] %v371_v44 }
  0x53   : > { %491 = shalt.err (!%p488_p4)
}
  0x54   : > { %s492_s17 = scalar_lea.hbm %s795_s2, 6144  ;;  %s496_s24 = scalar_lea.hbm %s852_s1, 12288 }
  0x55   : > { %p493_p6 = scmp.ne.s32.totalorder %s795_s2, %s492_s17  ;;  %p497_p12 = scmp.lt.u32.totalorder %s795_s2, %s852_s1 }
  0x56   : > { %p498_p1 = scmp.lt.u32.totalorder %s496_s24, %s492_s17  ;;  %p500_p8 = scmp.lt.u32.totalorder %s492_s17, %s795_s2 }
  0x57   : > { %p494_p7 = pnand %p493_p6, %p860_p9 }
  0x58   : > { %p499_p3 = por %p498_p1, %p497_p12 }
  0x59   : > { %p495_p10 = pneg %p494_p7 }
  0x5a   : > { %p501_p11 = por %p500_p8, %p499_p3 }
  0x5c   : > { %p502_p0 = pnand %p501_p11, %p495_p10 }
  0x5e   : > { %505 = shalt.err (!%p502_p0)
}
  0x5f   : > { %s567_s3 = smov 256   ;;  %s568_s4 = smov 16  }
  0x60   : > { %383 = dma.vmem_to_hbm [thread:$0]  (%p860_p9), %s784_s28, 6144, %s795_s2, %s252_s5, %s567_s3, %s567_s3, %s568_s4  }
  0x61 PF: > { %s282_s25 = sand.u32 1, %s540_s6   ;;  %p861_p5 = scmp.ne.s32.totalorder %s857_s21, 0 }
  0x62   : > { %p862_p13 = scmp.ge.s32.totalorder %s560_s11, 2  ;;  %s283_s18 = scalar_lea.sflag [#allocation4], %s282_s25 }
  0x64   : > { %p390_p2 = pnand %p862_p13, %p861_p5 }
  0x66   : > { %535 = dma.done.wait (!%p390_p2), %s283_s18, 6144  }
  0x67   : > { %537 = vsyncadd (!%p390_p2), %s283_s18, 4294961152  ;;  %s17_s11 = sadd.s32 1, %s560_s11   ;;  %s863_s6 = smov %s544_s7 }
  0x68   : > { %p14_p4 = scmp.ge.s32.totalorder %s17_s11, 4   ;;  %s864_s7 = smov %s548_s8 }
  0x69   : > { %s865_s8 = smov %s635_s20  ;;  %s866_s9 = smov %s556_s10 }
  0x6a   : > { %s867_s10 = smov %s869_s14  ;;  %16 = sbr.rel (!%p14_p4) target bundleno = 6 (0x6), region = 73 }
  0x71   :  { %288 = vsyncpa [#allocation3], 1 }
  0x72   :  { %290 = vsyncpa [#allocation3 + $0x1], 1 }
  0x73   :  { %291 = vsyncpa [#allocation4], 1 }
  0x74   :  { %293 = vsyncpa [#allocation4 + $0x1], 1 }

</bundles_post_ra>
